<compile_context>
chip_gen: v6e
topology: v6e:2x2x1
jax: 0.10.0
libtpu: 0.0.40
codegen_flags: <defaults>
</compile_context>

<pallas_src>
import functools

import jax
import jax.numpy as jnp
from jax.experimental import pallas as pl
from jax.experimental.pallas import tpu as pltpu

_EPS = 1e-7
_LANE = 512                 # lane-dense row width (multiple of 128)
_MIN_TR = 8                 # sublane granularity
_MAX_TILE_ELEMS = 1 << 20   # ~4 MiB of f32 work per tile (keeps f32 temps + 2x
                            # double-buffered input well under the 32 MiB VMEM limit)


def _cdiv(a, b):
    return (a + b - 1) // b


def _cycle_bulk_kernel(p_ref, out_ref, *, total_valid, tile_rows, needs_mask):
    """Partial sum of the bulk (target==0) focal term over one lane-dense tile."""
    p = p_ref[...].astype(jnp.float32)            # upcast after the VMEM load
    p = jnp.clip(p, _EPS, 1.0 - _EPS)
    # target==0 everywhere in the bulk pass: focal = p^2, ce = -log(1-p)
    f = (p * p) * (-jnp.log(1.0 - p))             # single EUP log per element

    tr, lane = f.shape
    if needs_mask:
        # Zero the zero-padded tail of the flattened array. Only compiled in when
        # padding exists; iota+cmp+select is cheap VPU work and we are HBM-bound.
        row = pl.program_id(0) * tile_rows + jax.lax.broadcasted_iota(
            jnp.int32, (tr, lane), 0)
        col = jax.lax.broadcasted_iota(jnp.int32, (tr, lane), 1)
        f = jnp.where(row * lane + col < total_valid, f, 0.0)

    # Reduce the tile to one (8, lane) slab with pure vreg-wise VPU adds
    # (no cross-lane/sublane XLU reduce, no scalar broadcast). The tiny final
    # reduction over (num_tiles*8, lane) happens once in the wrapper.
    out_ref[...] = jnp.sum(f.reshape(tr // 8, 8, lane), axis=0)


def cycle_loss(breakdown_prob: jax.Array,
               breakdown_cycles: jax.Array,
               initial_cycles: int = 5) -> jax.Array:
    """Pallas TPU implementation of CycleLoss.forward. Returns a scalar float32."""
    b, s = breakdown_prob.shape
    total = b * s

    # ---- lane-dense tiling of the flattened probabilities --------------------
    rows = max(1, _cdiv(total, _LANE))
    max_tr = max(_MIN_TR, (_MAX_TILE_ELEMS // _LANE) // _MIN_TR * _MIN_TR)
    if rows >= 2 * _MIN_TR:
        # At least two tiles so the "parallel" grid axis shards across both
        # TensorCores on v7x; more tiles only when one would exceed the budget.
        want_tiles = max(2, _cdiv(rows, max_tr))
    else:
        want_tiles = 1
    tr = min(max_tr, _cdiv(_cdiv(rows, want_tiles), _MIN_TR) * _MIN_TR)
    num_tiles = _cdiv(rows, tr)
    padded_rows = num_tiles * tr
    padded_total = padded_rows * _LANE
    needs_mask = padded_total != total

    flat = breakdown_prob.reshape(-1)             # free (row-major flatten)
    if needs_mask:
        flat = jnp.pad(flat, (0, padded_total - total))
    p2d = flat.reshape(padded_rows, _LANE)

    kernel = functools.partial(_cycle_bulk_kernel, total_valid=total,
                               tile_rows=tr, needs_mask=needs_mask)
    partials = pl.pallas_call(
        kernel,
        out_shape=jax.ShapeDtypeStruct((num_tiles * 8, _LANE), jnp.float32),
        grid=(num_tiles,),
        in_specs=[pl.BlockSpec((tr, _LANE), lambda i: (i, 0))],
        out_specs=pl.BlockSpec((8, _LANE), lambda i: (i, 0)),
        compiler_params=pltpu.CompilerParams(
            dimension_semantics=("parallel",),        # megacore sharding on v7x
            vmem_limit_bytes=32 * 1024 * 1024,        # explicit: covers v5e/v6e/v7x
        ),
    )(p2d)
    bulk_sum = jnp.sum(partials)

    # ---- per-row "hit" correction (B gathered elements) in plain JAX ---------
    idx = breakdown_cycles.astype(jnp.int32) - jnp.int32(initial_cycles)
    valid = (idx >= 0) & (idx < s)
    safe = jnp.clip(idx, 0, s - 1)
    p_hit = jnp.take_along_axis(breakdown_prob, safe[:, None], axis=1)[:, 0]
    p_hit = jnp.clip(p_hit.astype(jnp.float32), _EPS, 1.0 - _EPS)
    g_hit = (1.0 - p_hit) * (1.0 - p_hit) * (-jnp.log(p_hit))   # target==1 term
    f_hit = (p_hit * p_hit) * (-jnp.log(1.0 - p_hit))           # already in bulk
    corr = jnp.sum(jnp.where(valid, g_hit - f_hit, 0.0))

    return (bulk_sum + corr) / jnp.float32(total)


def _cycle_loss_ref(breakdown_prob, breakdown_cycles, initial_cycles=5):
    """Pure-JAX reference mirroring the PyTorch code (for correctness checks)."""
    b, s = breakdown_prob.shape
    idx = breakdown_cycles.astype(jnp.int32) - initial_cycles
    col = jnp.arange(s, dtype=jnp.int32)[None, :]
    target = (col == idx[:, None]).astype(jnp.float32)
    eps = 1e-7
    p = jnp.clip(breakdown_prob.astype(jnp.float32), eps, 1.0 - eps)
    ce = -(target * jnp.log(p) + (1.0 - target) * jnp.log(1.0 - p))
    pt = jnp.where(target == 1.0, p, 1.0 - p)
    focal = (1.0 - pt) ** 2.0
    return jnp.mean(focal * ce)


if __name__ == "__main__":
    key = jax.random.PRNGKey(0)
    k1, k2 = jax.random.split(key)

    batch, seq_len = 3, 8
    initial_cycles = 5

    breakdown_prob = jax.random.uniform(k1, (batch, seq_len), dtype=jnp.float32,
                                        minval=0.01, maxval=0.99)
    # in-range (7 -> idx 2), past-the-end (20 -> idx 15 >= S), negative (3 -> idx -2)
    breakdown_cycles = jnp.array([7, 20, 3], dtype=jnp.int32)

    loss = cycle_loss(breakdown_prob, breakdown_cycles, initial_cycles)
    jax.block_until_ready(loss)
    ref = _cycle_loss_ref(breakdown_prob, breakdown_cycles, initial_cycles)
    assert jnp.allclose(loss, ref, rtol=1e-5, atol=1e-6), (loss, ref)

    # Larger shape: exercises the multi-tile "parallel" grid + tail masking.
    bp2 = jax.random.uniform(k2, (64, 200), dtype=jnp.float32,
                             minval=0.001, maxval=0.999)
    bc2 = jax.random.randint(jax.random.PRNGKey(1), (64,), 0, 260, dtype=jnp.int32)
    loss2 = cycle_loss(bp2, bc2, initial_cycles)
    jax.block_until_ready(loss2)
    ref2 = _cycle_loss_ref(bp2, bc2, initial_cycles)
    assert jnp.allclose(loss2, ref2, rtol=1e-5, atol=1e-6), (loss2, ref2)

    # bf16 input check (kernel reads bf16 from HBM, upcasts after the VMEM load).
    loss_bf16 = cycle_loss(breakdown_prob.astype(jnp.bfloat16),
                           breakdown_cycles, initial_cycles)
    jax.block_until_ready(loss_bf16)
    ref_bf16 = _cycle_loss_ref(breakdown_prob.astype(jnp.bfloat16).astype(jnp.float32),
                               breakdown_cycles, initial_cycles)
    assert jnp.allclose(loss_bf16, ref_bf16, rtol=1e-4, atol=1e-5), (loss_bf16, ref_bf16)

    print("KERNEL_OK")
</pallas_src>

<mosaic_0001>
module attributes {stable_mosaic.version = 11 : i64} {
  func.func @_cycle_bulk_kernel(%arg0: i32, %arg1: memref<8x512xf32, #tpu.memory_space<vmem>>, %arg2: memref<8x512xf32, #tpu.memory_space<vmem>>) attributes {dimension_semantics = [#tpu.dimension_semantics<parallel>], iteration_bounds = array<i64: 1>, scalar_prefetch = 0 : i64, scratch_operands = 0 : i64, tpu.core_type = #tpu.core_type<tc>, window_params = [{transform_indices = @transform_0, window_bounds = array<i64: 8, 512>}, {transform_indices = @transform_1, window_bounds = array<i64: 8, 512>}]} {
    %c0 = arith.constant 0 : index
    %c0_0 = arith.constant 0 : index
    %0 = vector.load %arg1[%c0, %c0_0] : memref<8x512xf32, #tpu.memory_space<vmem>>, vector<8x512xf32>
    %cst = arith.constant 1.000000e-07 : f32
    %cst_1 = arith.constant 0.99999988 : f32
    %1 = vector.broadcast %cst : f32 to vector<8x512xf32>
    %2 = arith.maximumf %1, %0 : vector<8x512xf32>
    %3 = vector.broadcast %cst_1 : f32 to vector<8x512xf32>
    %4 = arith.minimumf %3, %2 : vector<8x512xf32>
    %5 = arith.mulf %4, %4 : vector<8x512xf32>
    %cst_2 = arith.constant 1.000000e+00 : f32
    %6 = vector.broadcast %cst_2 : f32 to vector<8x512xf32>
    %7 = arith.subf %6, %4 : vector<8x512xf32>
    %8 = math.log %7 : vector<8x512xf32>
    %cst_3 = arith.constant 0.000000e+00 : f32
    %9 = vector.broadcast %cst_3 : f32 to vector<8x512xf32>
    %10 = arith.subf %9, %8 : vector<8x512xf32>
    %11 = arith.mulf %5, %10 : vector<8x512xf32>
    %c8_i32 = arith.constant 8 : i32
    %12 = arith.muli %arg0, %c8_i32 : i32
    %13 = tpu.iota {dimensions = array<i32: 0>} : vector<8x512xi32>
    %14 = vector.broadcast %12 : i32 to vector<8x512xi32>
    %15 = arith.addi %14, %13 : vector<8x512xi32>
    %16 = tpu.iota {dimensions = array<i32: 1>} : vector<8x512xi32>
    %c512_i32 = arith.constant 512 : i32
    %17 = vector.broadcast %c512_i32 : i32 to vector<8x512xi32>
    %18 = arith.muli %15, %17 : vector<8x512xi32>
    %19 = arith.addi %18, %16 : vector<8x512xi32>
    %c24_i32 = arith.constant 24 : i32
    %20 = vector.broadcast %c24_i32 : i32 to vector<8x512xi32>
    %21 = arith.cmpi slt, %19, %20 : vector<8x512xi32>
    %cst_4 = arith.constant 0.000000e+00 : f32
    %22 = vector.broadcast %cst_4 : f32 to vector<8x512xf32>
    %23 = arith.select %21, %11, %22 : vector<8x512xi1>, vector<8x512xf32>
    %24 = vector.shape_cast %23 : vector<8x512xf32> to vector<1x8x512xf32>
    %cst_5 = arith.constant dense<0.000000e+00> : vector<8x512xf32>
    %25 = vector.multi_reduction <add>, %24, %cst_5 [0] : vector<1x8x512xf32> to vector<8x512xf32>
    %c0_6 = arith.constant 0 : index
    %c0_7 = arith.constant 0 : index
    %26 = vector.load %arg2[%c0_6, %c0_7] : memref<8x512xf32, #tpu.memory_space<vmem>>, vector<8x512xf32>
    tpu.vector_store %arg2[%c0_6, %c0_7], %25 {strides = array<i32>} : memref<8x512xf32, #tpu.memory_space<vmem>>, vector<8x512xf32>,
    return
  }
  func.func @transform_0(%arg0: i32) -> (i32, i32) {
    %c0_i32 = arith.constant 0 : i32
    %c0_i32_0 = arith.constant 0 : i32
    return %arg0, %c0_i32 : i32, i32
  }
  func.func @transform_1(%arg0: i32) -> (i32, i32) {
    %c0_i32 = arith.constant 0 : i32
    %c0_i32_0 = arith.constant 0 : i32
    return %arg0, %c0_i32 : i32, i32
  }
}

</mosaic_0001>

<bundles_post_ra>
// kernel: tpu_custom_call.1
= control target key start
LH: loop header
LB: loop body
LE: loop exit
PB: predicated region body
PF: predicated region fallthrough
CT: control target
= control target key end

     0   :  { %6 = vsyncpa [#allocation3], 0  ;;  %s175_s0 = inlined_call_operand.hbm [shape: f32[8,512], index: 0, kind: input, shape index: {}]   ;;  %s176_s1 = inlined_call_operand.hbm [shape: f32[8,512], index: 1, kind: output, shape index: {}]  }
   0x1   :  { %7 = vsyncpa [#allocation4], 0  ;;  %s157_s6 = smov [#allocation2]  }
   0x2   :  { %s14_s7 = sshll.u32 %s157_s6, 4  ;;  %s15_s7 = int_to_ptr.vmem [resolvable:$true] %s14_s7 }
   0x3   :  { %s121_s8 = scalar_lea.vmem %s15_s7, 512  ;;  %p126_p1 = scmp.lt.s32.totalorder %s15_s7, %s15_s7 }
   0x4   :  { %p122_p0 = scmp.ne.s32.totalorder %s15_s7, %s121_s8  ;;  %p127_p2 = scmp.lt.s32.totalorder %s121_s8, %s121_s8 }
   0x6   :  { %p128_p3 = por %p127_p2, %p126_p1 }
   0x8   :  { %p129_p4 = pnand %p128_p3, %p122_p0 }
   0xa   :  { %132 = shalt.err (!%p129_p4)
}
   0xb   :  { %17 = dma.hbm_to_vmem [thread:$0]  %s175_s0, 512, %s15_s7, [#allocation3]  }
   0xc   :  { %153 = dma.done.wait [#allocation3], 512  }
   0xd   :  { %154 = vsyncadd [#allocation3], 4294966784  ;;  %v21_v0 = vld [vmem:[#allocation2] sm:$0xff]  ;;  %v22_v1 = vld [vmem:[#allocation2 + $0x8] sm:$0xff]  ;;  %v58_v15 = vlaneseq  ;;  %s158_s0 = smov [#allocation5]  }
   0xe   :  { %v23_v2 = vld [vmem:[#allocation2 + $0x10] sm:$0xff]  ;;  %v25_v3 = vmax.f32 %v21_v0, 1e-07  ;;  %v26_v4 = vmax.f32 %v22_v1, 1e-07  ;;  %v24_v6 = vld [vmem:[#allocation2 + $0x18] sm:$0xff] }
   0xf   :  { %v27_v5 = vmax.f32 %v23_v2, 1e-07  ;;  %v28_v9 = vmax.f32 %v24_v6, 1e-07  ;;  %v59_v17 = vshrl.u32 %v58_v15, 7  ;;  %v63_v18 = vand.u32 127, %v58_v15 }
  0x10   :  { %v29_v7 = vmin.f32 %v25_v3, 0.9999999  ;;  %v30_v8 = vmin.f32 %v26_v4, 0.9999999  ;;  %s94_s11 = sshll.u32 %s158_s0, 4  ;;  %s95_s11 = int_to_ptr.vmem [resolvable:$true] %s94_s11 }
  0x11   :  { %v31_v10 = vmin.f32 %v27_v5, 0.9999999  ;;  %v32_v14 = vmin.f32 %v28_v9, 0.9999999  ;;  %v67_v19 = vmul.u32 512, %v59_v17  ;;  %v64_v20 = vadd.s32 128, %v63_v18  ;;  %p138_p6 = scmp.lt.s32.totalorder %s95_s11, %s95_s11 }
  0x12   :  { %v37_v11 = vsub.f32 1.0, %v29_v7  ;;  %v38_v12 = vsub.f32 1.0, %v30_v8  ;;  %v65_v21 = vadd.s32 256, %v63_v18  ;;  %v66_v22 = vadd.s32 384, %v63_v18  ;;  %s133_s12 = scalar_lea.vmem %s95_s11, 512 }
  0x13   :  { %v39_v13 = vsub.f32 1.0, %v31_v10  ;;  %v40_v16 = vsub.f32 1.0, %v32_v14  ;;  %v68_v24 = vadd.s32 %v67_v19, %v63_v18  ;;  %v33_v26 = vmul.f32 %v29_v7, %v29_v7  ;;  %p134_p5 = scmp.ne.s32.totalorder %s95_s11, %s133_s12  ;;  %p139_p7 = scmp.lt.s32.totalorder %s133_s12, %s133_s12 }
  0x14   :  { %105 = vlog2.f32 %v37_v11  ;;  %v69_v28 = vadd.s32 %v67_v19, %v64_v20  ;;  %v34_v30 = vmul.f32 %v30_v8, %v30_v8  ;;  %v70_v32 = vadd.s32 %v67_v19, %v65_v21 }
  0x15   :  { %107 = vlog2.f32 %v38_v12  ;;  %v35_v35 = vmul.f32 %v31_v10, %v31_v10  ;;  %v71_v37 = vadd.s32 %v67_v19, %v66_v22  ;;  %vm72_vm0 = vcmp.lt.s32.totalorder %v68_v24, 24  ;;  %p140_p8 = por %p139_p7, %p138_p6 }
  0x16   :  { %109 = vlog2.f32 %v39_v13  ;;  %v36_v39 = vmul.f32 %v32_v14, %v32_v14  ;;  %vm73_vm1 = vcmp.lt.s32.totalorder %v69_v28, 24  ;;  %vm74_vm2 = vcmp.lt.s32.totalorder %v70_v32, 24 }
  0x17   :  { %111 = vlog2.f32 %v40_v16  ;;  %vm75_vm3 = vcmp.lt.s32.totalorder %v71_v37, 24  ;;  %p141_p9 = pnand %p140_p8, %p134_p5 }
  0x21   :  { %v106_v23 = vpop.eup %105 }
  0x22   :  { %v108_v25 = vpop.eup %107  ;;  %v42_v27 = vmul.f32 0.6931472, %v106_v23 }
  0x23   :  { %v110_v29 = vpop.eup %109  ;;  %v44_v31 = vmul.f32 0.6931472, %v108_v25 }
  0x24   :  { %v112_v33 = vpop.eup %111  ;;  %v49_v34 = vsub.f32 0.0, %v42_v27  ;;  %v46_v36 = vmul.f32 0.6931472, %v110_v29 }
  0x25   :  { %v50_v38 = vsub.f32 0.0, %v44_v31  ;;  %v48_v40 = vmul.f32 0.6931472, %v112_v33 }
  0x26   :  { %v53_v41 = vmul.f32 %v49_v34, %v33_v26  ;;  %v51_v42 = vsub.f32 0.0, %v46_v36 }
  0x27   :  { %v54_v43 = vmul.f32 %v50_v38, %v34_v30  ;;  %v52_v44 = vsub.f32 0.0, %v48_v40 }
  0x28   :  { %v76_v45 = vsel %vm72_vm0, %v53_v41, 0.0  ;;  %v55_v46 = vmul.f32 %v51_v42, %v35_v35 }
  0x29   :  { %84 = vst [vmem:[#allocation5] sm:$0xff] %v76_v45  ;;  %v77_v47 = vsel %vm73_vm1, %v54_v43, 0.0  ;;  %v56_v48 = vmul.f32 %v52_v44, %v36_v39 }
  0x2a   :  { %85 = vst [vmem:[#allocation5 + $0x8] sm:$0xff] %v77_v47  ;;  %v78_v49 = vsel %vm74_vm2, %v55_v46, 0.0 }
  0x2b   :  { %86 = vst [vmem:[#allocation5 + $0x10] sm:$0xff] %v78_v49  ;;  %v79_v50 = vsel %vm75_vm3, %v56_v48, 0.0 }
  0x2c   :  { %87 = vst [vmem:[#allocation5 + $0x18] sm:$0xff] %v79_v50 }
  0x2d   :  { %144 = shalt.err (!%p141_p9)
}
  0x2e   :  { %97 = dma.vmem_to_hbm [thread:$0]  %s95_s11, 512, %s176_s1, [#allocation4]  }
  0x2f   :  { %155 = dma.done.wait [#allocation4], 512  }
  0x30   :  { %156 = vsyncadd [#allocation4], 4294966784 }
  0x31   :  { %101 = vsyncpa [#allocation3], 1 }
  0x32   :  { %102 = vsyncpa [#allocation4], 1 }

</bundles_post_ra>
